<compile_context>
chip_gen: v5e
topology: v5e:2x2
jax: 0.10.0
libtpu: 0.0.40
codegen_flags: <defaults>
</compile_context>

<pallas_src>
import jax
import jax.numpy as jnp
from jax.experimental import pallas as pl
from jax.experimental.pallas import tpu as pltpu


def q_mlp_kernel(x_ref, w1_ref, b1_ref, w2_ref, b2_ref, o_ref):
    # x_ref : (S, Bt)  bf16      w1_ref: (H, S) bf16   b1_ref: (H, 1) f32
    # w2_ref: (A, H)  bf16       b2_ref: (A, 1) f32    o_ref : (A, Bt) f32
    h = jnp.dot(w1_ref[...], x_ref[...], preferred_element_type=jnp.float32)
    h = jnp.maximum(h + b1_ref[...], 0.0)                      # ReLU, f32
    out = jnp.dot(w2_ref[...], h.astype(w2_ref.dtype),
                  preferred_element_type=jnp.float32)
    o_ref[...] = out + b2_ref[...]


def q_forward(x, w1, b1, w2, b2, *, batch_tile=512):
    """x: (B, S) f32. w1: (H, S), b1: (H,), w2: (A, H), b2: (A,) — torch layout."""
    B, S = x.shape
    H = w1.shape[0]
    A = w2.shape[0]

    Bt = batch_tile
    B_pad = pl.cdiv(B, Bt) * Bt

    # Transpose so batch is the lane axis; pad batch to a tile multiple.
    x_t = jnp.zeros((S, B_pad), jnp.bfloat16).at[:, :B].set(
        x.T.astype(jnp.bfloat16))
    w1b = w1.astype(jnp.bfloat16)
    w2b = w2.astype(jnp.bfloat16)
    b1c = b1.reshape(H, 1).astype(jnp.float32)
    b2c = b2.reshape(A, 1).astype(jnp.float32)

    out_t = pl.pallas_call(
        q_mlp_kernel,
        out_shape=jax.ShapeDtypeStruct((A, B_pad), jnp.float32),
        grid=(B_pad // Bt,),
        in_specs=[
            pl.BlockSpec((S, Bt), lambda i: (0, i)),   # x tile: new batch slab per step
            pl.BlockSpec((H, S), lambda i: (0, 0)),    # weights/biases: VMEM-resident
            pl.BlockSpec((H, 1), lambda i: (0, 0)),
            pl.BlockSpec((A, H), lambda i: (0, 0)),
            pl.BlockSpec((A, 1), lambda i: (0, 0)),
        ],
        out_specs=pl.BlockSpec((A, Bt), lambda i: (0, i)),
        compiler_params=pltpu.CompilerParams(
            dimension_semantics=("parallel",),          # v7x: shard batch grid across TCs
        ),
    )(x_t, w1b, b1c, w2b, b2c)

    # Strip batch padding and return PyTorch-shaped (B, A) output.
    return out_t[:, :B].T


def init_params(key, state_dim, action_dim, hidden_dim=50):
    # nn.Linear-style U(-1/sqrt(fan_in), 1/sqrt(fan_in)), torch (out, in) layout.
    k1, k2, k3, k4 = jax.random.split(key, 4)
    lim1 = 1.0 / jnp.sqrt(state_dim)
    lim2 = 1.0 / jnp.sqrt(hidden_dim)
    w1 = jax.random.uniform(k1, (hidden_dim, state_dim), jnp.float32, -lim1, lim1)
    b1 = jax.random.uniform(k2, (hidden_dim,), jnp.float32, -lim1, lim1)
    w2 = jax.random.uniform(k3, (action_dim, hidden_dim), jnp.float32, -lim2, lim2)
    b2 = jax.random.uniform(k4, (action_dim,), jnp.float32, -lim2, lim2)
    return w1, b1, w2, b2


if __name__ == "__main__":
    state_dim, action_dim, hidden_dim = 4, 2, 50
    batch = 2

    key = jax.random.PRNGKey(0)
    kx, kp = jax.random.split(key)
    x = jax.random.normal(kx, (batch, state_dim), jnp.float32)
    w1, b1, w2, b2 = init_params(kp, state_dim, action_dim, hidden_dim)

    out = q_forward(x, w1, b1, w2, b2)
    jax.block_until_ready(out)
    assert out.shape == (batch, action_dim)

    # Reference with the same bf16 operand cast, f32 accumulate (matches MXU math).
    f32 = lambda a: a.astype(jnp.bfloat16).astype(jnp.float32)
    h_ref = jnp.maximum(f32(x) @ f32(w1).T + b1, 0.0)
    ref = f32(h_ref) @ f32(w2).T + b2
    assert jnp.allclose(out, ref, atol=1e-3, rtol=1e-3), "mismatch vs reference"

    # Sanity against full-f32 math (loose tolerance for bf16 inputs).
    ref_f32 = jnp.maximum(x @ w1.T + b1, 0.0) @ w2.T + b2
    assert jnp.allclose(out, ref_f32, atol=5e-2, rtol=5e-2)

    print("KERNEL_OK")
</pallas_src>

<mosaic_0001>
module attributes {stable_mosaic.version = 11 : i64} {
  func.func @q_mlp_kernel(%arg0: i32, %arg1: memref<4x512xbf16, #tpu.memory_space<vmem>>, %arg2: memref<50x4xbf16, #tpu.memory_space<vmem>>, %arg3: memref<50x1xf32, #tpu.memory_space<vmem>>, %arg4: memref<2x50xbf16, #tpu.memory_space<vmem>>, %arg5: memref<2x1xf32, #tpu.memory_space<vmem>>, %arg6: memref<2x512xf32, #tpu.memory_space<vmem>>) attributes {dimension_semantics = [#tpu.dimension_semantics<parallel>], iteration_bounds = array<i64: 1>, scalar_prefetch = 0 : i64, scratch_operands = 0 : i64, tpu.core_type = #tpu.core_type<tc>, window_params = [{transform_indices = @transform_0, window_bounds = array<i64: 4, 512>}, {pipeline_mode = #tpu.pipeline_mode<synchronous>, transform_indices = @transform_1, window_bounds = array<i64: 50, 4>}, {pipeline_mode = #tpu.pipeline_mode<synchronous>, transform_indices = @transform_2, window_bounds = array<i64: 50, 1>}, {pipeline_mode = #tpu.pipeline_mode<synchronous>, transform_indices = @transform_3, window_bounds = array<i64: 2, 50>}, {pipeline_mode = #tpu.pipeline_mode<synchronous>, transform_indices = @transform_4, window_bounds = array<i64: 2, 1>}, {transform_indices = @transform_5, window_bounds = array<i64: 2, 512>}]} {
    %c0 = arith.constant 0 : index
    %c0_0 = arith.constant 0 : index
    %0 = vector.load %arg2[%c0, %c0_0] : memref<50x4xbf16, #tpu.memory_space<vmem>>, vector<50x4xbf16>
    %c0_1 = arith.constant 0 : index
    %c0_2 = arith.constant 0 : index
    %1 = vector.load %arg1[%c0_1, %c0_2] : memref<4x512xbf16, #tpu.memory_space<vmem>>, vector<4x512xbf16>
    %cst = arith.constant dense<0.000000e+00> : vector<50x512xf32>
    %2 = tpu.matmul %0, %1, %cst {dimension_numbers = #tpu.dot_dimension_numbers<[1], [0], [0], [1], [0, 0, 1, 1], [], []>} : vector<50x4xbf16>, vector<4x512xbf16>, vector<50x512xf32> -> vector<50x512xf32>
    %c0_3 = arith.constant 0 : index
    %c0_4 = arith.constant 0 : index
    %3 = vector.load %arg3[%c0_3, %c0_4] : memref<50x1xf32, #tpu.memory_space<vmem>>, vector<50x1xf32>
    %4 = vector.broadcast %3 : vector<50x1xf32> to vector<50x512xf32>
    %5 = arith.addf %2, %4 : vector<50x512xf32>
    %cst_5 = arith.constant 0.000000e+00 : f32
    %6 = vector.broadcast %cst_5 : f32 to vector<50x512xf32>
    %7 = arith.maximumf %5, %6 : vector<50x512xf32>
    %c0_6 = arith.constant 0 : index
    %c0_7 = arith.constant 0 : index
    %8 = vector.load %arg4[%c0_6, %c0_7] : memref<2x50xbf16, #tpu.memory_space<vmem>>, vector<2x50xbf16>
    %9 = arith.truncf %7 : vector<50x512xf32> to vector<50x512xbf16>
    %cst_8 = arith.constant dense<0.000000e+00> : vector<2x512xf32>
    %10 = tpu.matmul %8, %9, %cst_8 {dimension_numbers = #tpu.dot_dimension_numbers<[1], [0], [0], [1], [0, 0, 1, 1], [], []>} : vector<2x50xbf16>, vector<50x512xbf16>, vector<2x512xf32> -> vector<2x512xf32>
    %c0_9 = arith.constant 0 : index
    %c0_10 = arith.constant 0 : index
    %11 = vector.load %arg5[%c0_9, %c0_10] : memref<2x1xf32, #tpu.memory_space<vmem>>, vector<2x1xf32>
    %12 = vector.broadcast %11 : vector<2x1xf32> to vector<2x512xf32>
    %13 = arith.addf %10, %12 : vector<2x512xf32>
    %c0_11 = arith.constant 0 : index
    %c0_12 = arith.constant 0 : index
    %14 = vector.load %arg6[%c0_11, %c0_12] : memref<2x512xf32, #tpu.memory_space<vmem>>, vector<2x512xf32>
    tpu.vector_store %arg6[%c0_11, %c0_12], %13 {strides = array<i32>} : memref<2x512xf32, #tpu.memory_space<vmem>>, vector<2x512xf32>,
    return
  }
  func.func @transform_0(%arg0: i32) -> (i32, i32) {
    %c0_i32 = arith.constant 0 : i32
    %c0_i32_0 = arith.constant 0 : i32
    return %c0_i32, %arg0 : i32, i32
  }
  func.func @transform_1(%arg0: i32) -> (i32, i32) {
    %c0_i32 = arith.constant 0 : i32
    %c0_i32_0 = arith.constant 0 : i32
    %c0_i32_1 = arith.constant 0 : i32
    return %c0_i32, %c0_i32_0 : i32, i32
  }
  func.func @transform_2(%arg0: i32) -> (i32, i32) {
    %c0_i32 = arith.constant 0 : i32
    %c0_i32_0 = arith.constant 0 : i32
    %c0_i32_1 = arith.constant 0 : i32
    return %c0_i32, %c0_i32_0 : i32, i32
  }
  func.func @transform_3(%arg0: i32) -> (i32, i32) {
    %c0_i32 = arith.constant 0 : i32
    %c0_i32_0 = arith.constant 0 : i32
    %c0_i32_1 = arith.constant 0 : i32
    return %c0_i32, %c0_i32_0 : i32, i32
  }
  func.func @transform_4(%arg0: i32) -> (i32, i32) {
    %c0_i32 = arith.constant 0 : i32
    %c0_i32_0 = arith.constant 0 : i32
    %c0_i32_1 = arith.constant 0 : i32
    return %c0_i32, %c0_i32_0 : i32, i32
  }
  func.func @transform_5(%arg0: i32) -> (i32, i32) {
    %c0_i32 = arith.constant 0 : i32
    %c0_i32_0 = arith.constant 0 : i32
    return %c0_i32, %arg0 : i32, i32
  }
}

</mosaic_0001>

<bundles_post_ra>
// kernel: tpu_custom_call.1
= control target key start
LH: loop header
LB: loop body
LE: loop exit
PB: predicated region body
PF: predicated region fallthrough
CT: control target
= control target key end

     0   :  { %v446_v1 = vmov 0   ;;  %s602_s0 = inlined_call_operand.vmem [shape: bf16[4,512], index: 0, kind: input, shape index: {}]   ;;  %s603_s1 = inlined_call_operand.vmem [shape: bf16[50,4], index: 1, kind: input, shape index: {}]   ;;  %s604_s2 = inlined_call_operand.vmem [shape: f32[50,1], index: 2, kind: input, shape index: {}]   ;;  %s605_s3 = inlined_call_operand.vmem [shape: bf16[2,50], index: 3, kind: input, shape index: {}]   ;;  %s606_s4 = inlined_call_operand.vmem [shape: f32[2,1], index: 4, kind: input, shape index: {}]   ;;  %s607_s5 = inlined_call_operand.hbm [shape: f32[2,512], index: 5, kind: output, shape index: {}]  }
   0x1   :  { %v29_v0 = vld [vmem:[%s602_s0] sm:$0xff]  ;;  %417 = vset.pattern.permute.xlu0 %v446_v1  ;;  %v36_v2 = vld [vmem:[%s604_s2 + $0x30] sm:$0x3]  ;;  %418 = vset.pattern.permute.xlu1 %v446_v1  ;;  %v35_v3 = vld [vmem:[%s604_s2 + $0x28] sm:$0xff] }
   0x2   :  { %91 = vst [vmem:[#allocation1] ss:$4 sm:$0xff] %v29_v0  ;;  %69 = vperm.xlu0 %417, %v36_v2   ;;  %419 = vset.pattern.permute.xlu2 %v446_v1 }
   0x3   :  { %10 = vsyncpa [#allocation3], 0  ;;  %64 = vperm.xlu1 %418, %v35_v3   ;;  %vm109_vm0 = vcmask 1041408   ;;  %v34_v4 = vld [vmem:[%s604_s2 + $0x20] sm:$0xff]  ;;  %vm96_vm1 = vcmask 31744   ;;  %v33_v14 = vld [vmem:[%s604_s2 + $0x18] sm:$0xff] }
   0x4   :  { %v412_v10 = vld [vmem:[%s603_s1] sm:$0xff]  ;;  %v32_v15 = vld [vmem:[%s604_s2 + $0x10] sm:$0xff]  ;;  %v31_v16 = vld [vmem:[%s604_s2 + $0x8] sm:$0xff]  ;;  %54 = vperm.xlu2 %419, %v33_v14   ;;  %vm285_vm2 = vcmask 1040384   ;;  %vm281_vm3 = vcmask 408576   ;;  %vm358_vm4 = vcmask 1045508  }
   0x5   :  { %v30_v17 = vld [vmem:[%s604_s2] sm:$0xff]  ;;  %v413_v18 = vld [vmem:[%s603_s1 + $0x8] sm:$0xff]  ;;  %v414_v20 = vld [vmem:[%s603_s1 + $0x10] sm:$0xff]  ;;  %s371_s20 = sshll.u32 %s607_s5, 4  ;;  %vm360_vm5 = vcmask 1043456   ;;  %s372_s20 = int_to_ptr.hbm [resolvable:$true] %s371_s20 }
   0x6   :  { %v275_v19 = vld [vmem:[%s606_s4] sm:$0x3]  ;;  %v28_v21 = vld [vmem:[%s603_s1 + $0x18] sm:$0x1] }
   0x7   :  { %v85_v22 = vunpack.c.l.b16 %v28_v21 }
   0x9   :  { %v92_v5 = vld.sshfl [vmem:[#allocation1] sm:$0xff pattern:$0x73625140]  ;;  %v93_v6 = vld.sshfl [vmem:[#allocation1 + $0x8] sm:$0xff pattern:$0x73625140]  ;;  %v89_v23 = vpack.c.b16 %v85_v22, %v85_v22 }
   0xa   :  { %v110_v7 = vsel %vm109_vm0, %v92_v5, 0  ;;  %v112_v8 = vsel %vm109_vm0, %v93_v6, 0  ;;  %v94_v9 = vld.sshfl [vmem:[#allocation1 + $0x10] sm:$0xff pattern:$0x73625140]  ;;  %59 = vperm.xlu0 %417, %v34_v4  }
   0xb   :  { %125 = vmatpush.bf16.msra.mxu0 %v110_v7  ;;  %153 = vmatpush.bf16.msra.mxu1 %v112_v8  ;;  %v114_v11 = vsel %vm109_vm0, %v94_v9, 0  ;;  %v95_v12 = vld.sshfl [vmem:[#allocation1 + $0x18] sm:$0xff pattern:$0x73625140] }
   0xc   :  { %181 = vmatpush.bf16.msra.mxu2 %v114_v11  ;;  %v116_v13 = vsel %vm109_vm0, %v95_v12, 0  ;;  %49 = vperm.xlu1 %418, %v32_v15  }
   0xd   :  { %209 = vmatpush.bf16.msra.mxu3 %v116_v13  ;;  %39 = vperm.xlu2 %419, %v30_v17  }
   0xe   :  { %392 = vmatmul.msk.bf16.vlgmr.msra.gmra.mxu0 %vm96_vm1, %v412_v10  ;;  %396 = vmatmul.msk.bf16.vlgmr.msra.gmra.mxu1 %vm96_vm1, %v412_v10 }
   0xf   :  { %400 = vmatmul.msk.bf16.vlgmr.msra.gmra.mxu2 %vm96_vm1, %v412_v10 }
  0x10   :  { %404 = vmatmul.msk.bf16.vlgmr.msra.gmra.mxu3 %vm96_vm1, %v412_v10 }
  0x12   :  { %44 = vperm.xlu0 %417, %v31_v16  }
  0x14   :  { %278 = vperm.xlu1 %418, %v275_v19  }
  0x1e   :  { %393 = vmatmul.msk.bf16.gmra.mxu0 %vm96_vm1, %v413_v18  ;;  %397 = vmatmul.msk.bf16.gmra.mxu1 %vm96_vm1, %v413_v18 }
  0x1f   :  { %401 = vmatmul.msk.bf16.gmra.mxu2 %vm96_vm1, %v413_v18 }
  0x20   :  { %405 = vmatmul.msk.bf16.gmra.mxu3 %vm96_vm1, %v413_v18 }
  0x2e   :  { %394 = vmatmul.msk.bf16.gmra.mxu0 %vm96_vm1, %v414_v20  ;;  %398 = vmatmul.msk.bf16.gmra.mxu1 %vm96_vm1, %v414_v20 }
  0x2f   :  { %402 = vmatmul.msk.bf16.gmra.mxu2 %vm96_vm1, %v414_v20 }
  0x30   :  { %406 = vmatmul.msk.bf16.gmra.mxu3 %vm96_vm1, %v414_v20 }
  0x3e   :  { %395 = vmatmul.msk.bf16.gmra.mxu0 %vm96_vm1, %v89_v23  ;;  %399 = vmatmul.msk.bf16.gmra.mxu1 %vm96_vm1, %v89_v23 }
  0x3f   :  { %403 = vmatmul.msk.bf16.gmra.mxu2 %vm96_vm1, %v89_v23 }
  0x40   :  { %407 = vmatmul.msk.bf16.gmra.mxu3 %vm96_vm1, %v89_v23 }
  0x5e   :  { %v553_v43 = vpop.permute.xlu2 %54 }
  0x67   :  { %v555_v50 = vpop.permute.xlu2 %39 }
  0x74   :  { %v70_v41 = vpop.permute.xlu0 %69 }
  0x75   :  { %v65_v48 = vpop.permute.xlu1 %64 }
  0x7c   :  { %v60_v49 = vpop.permute.xlu0 %59 }
  0x7e   :  { %v50_v0 = vpop.permute.xlu1 %49 }
  0x84   :  { %v563_v2 = vpop.permute.xlu0 %44 }
  0x8b   :  { %v127_v24 = vpop.f32.mrf.mxu0  ;;  %v155_v25 = vpop.f32.mrf.mxu1 }
  0x8c   :  { %v558_v54 = vadd.f32 %v127_v24, %v555_v50  ;;  %v561_v63 = vadd.f32 %v155_v25, %v555_v50 }
  0x8e   :  { %v230_v6 = vmax.f32 %v558_v54, 0.0 }
  0x92   :  { %v537_v26 = vpop.f32.mrf.mxu2 }
  0x93   :  { %v539_v27 = vpop.f32.mrf.mxu3  ;;  %v129_v28 = vpop.f32.mrf.mxu0 }
  0x94   :  { %v157_v29 = vpop.f32.mrf.mxu1  ;;  %v130_v16 = vadd.f32 %v129_v28, %v563_v2 }
  0x95   :  { %v158_v17 = vadd.f32 %v157_v29, %v563_v2 }
  0x9a   :  { %v541_v30 = vpop.f32.mrf.mxu2 }
  0x9b   :  { %v543_v31 = vpop.f32.mrf.mxu3  ;;  %v132_v32 = vpop.f32.mrf.mxu0 }
  0x9c   :  { %v160_v33 = vpop.f32.mrf.mxu1  ;;  %v133_v4 = vadd.f32 %v132_v32, %v50_v0 }
  0x9d   :  { %v161_v5 = vadd.f32 %v160_v33, %v50_v0 }
  0x9e   :  { %v238_v25 = vmax.f32 %v133_v4, 0.0 }
  0x9f   :  { %v239_v32 = vmax.f32 %v161_v5, 0.0 }
  0xa2   :  { %v545_v34 = vpop.f32.mrf.mxu2 }
  0xa3   :  { %v547_v35 = vpop.f32.mrf.mxu3  ;;  %v134_v36 = vpop.f32.mrf.mxu0 }
  0xa4   :  { %v162_v37 = vpop.f32.mrf.mxu1  ;;  %v135_v7 = vadd.f32 %v134_v36, %v553_v43 }
  0xa5   :  { %v163_v11 = vadd.f32 %v162_v37, %v553_v43 }
  0xa6   :  { %v242_v33 = vmax.f32 %v135_v7, 0.0 }
  0xaa   :  { %v549_v38 = vpop.f32.mrf.mxu2 }
  0xab   :  { %v551_v39 = vpop.f32.mrf.mxu3  ;;  %v137_v40 = vpop.f32.mrf.mxu0 }
  0xac   :  { %v165_v42 = vpop.f32.mrf.mxu1  ;;  %v138_v57 = vadd.f32 %v137_v40, %v60_v49 }
  0xad   :  { %v166_v60 = vadd.f32 %v165_v42, %v60_v49  ;;  %v243_v42 = vmax.f32 %v163_v11, 0.0 }
  0xae   :  { %v246_v8 = vmax.f32 %v138_v57, 0.0 }
  0xaf   :  { %v247_v12 = vmax.f32 %v166_v60, 0.0 }
  0xb2   :  { %v193_v44 = vpop.f32.mrf.mxu2 }
  0xb3   :  { %v221_v45 = vpop.f32.mrf.mxu3  ;;  %v139_v46 = vpop.f32.mrf.mxu0  ;;  %v194_v28 = vadd.f32 %v193_v44, %v60_v49 }
  0xb4   :  { %v167_v47 = vpop.f32.mrf.mxu1  ;;  %v140_v58 = vadd.f32 %v139_v46, %v65_v48 }
  0xb5   :  { %v168_v61 = vadd.f32 %v167_v47, %v65_v48  ;;  %v222_v47 = vadd.f32 %v221_v45, %v60_v49  ;;  %v189_v45 = vadd.f32 %v545_v34, %v50_v0  ;;  %v248_v49 = vmax.f32 %v194_v28, 0.0 }
  0xb6   :  { %v250_v9 = vmax.f32 %v140_v58, 0.0  ;;  %v235_v58 = vmax.f32 %v158_v17, 0.0  ;;  %v214_v34 = vadd.f32 %v543_v31, %v563_v2  ;;  %v258_v31 = vld [vmem:[%s605_s3] sm:$0x1]  ;;  %s447_s3 = smov [#allocation2]  }
  0xb7   :  { %v251_v13 = vmax.f32 %v168_v61, 0.0  ;;  %s369_s17 = sshll.u32 %s447_s3, 4  ;;  %s370_s17 = int_to_ptr.vmem [resolvable:$true] %s369_s17 }
  0xb8   :  { %v267_v40 = vpack.c.bf16 %v250_v9, %v246_v8 }
  0xb9   :  { %v268_v29 = vpack.c.bf16 %v251_v13, %v247_v12 }
  0xba   :  { %v195_v51 = vpop.f32.mrf.mxu2 }
  0xbb   :  { %v223_v52 = vpop.f32.mrf.mxu3  ;;  %v142_v53 = vpop.f32.mrf.mxu0  ;;  %v196_v22 = vadd.f32 %v195_v51, %v65_v48 }
  0xbc   :  { %v143_v55 = vadd.f32 %v142_v53, %v70_v41  ;;  %v170_v56 = vpop.f32.mrf.mxu1  ;;  %v224_v36 = vadd.f32 %v223_v52, %v65_v48  ;;  %v219_v48 = vadd.f32 %v551_v39, %v553_v43  ;;  %v186_v39 = vadd.f32 %v541_v30, %v563_v2 }
  0xbd   :  { %v171_v59 = vadd.f32 %v170_v56, %v70_v41  ;;  %v231_v56 = vmax.f32 %v561_v63, 0.0  ;;  %v252_v51 = vmax.f32 %v196_v22, 0.0  ;;  %v249_v63 = vmax.f32 %v222_v47, 0.0 }
  0xbe   :  { %v254_v62 = vmax.f32 %v143_v55, 0.0  ;;  %v234_v55 = vmax.f32 %v130_v16, 0.0  ;;  %v253_v52 = vmax.f32 %v224_v36, 0.0  ;;  %v245_v4 = vmax.f32 %v219_v48, 0.0  ;;  %v279_v16 = vpop.permute.xlu1 %278 }
  0xbf   :  { %v255_v1 = vmax.f32 %v171_v59, 0.0  ;;  %v263_v59 = vpack.c.bf16 %v242_v33, %v238_v25  ;;  %v260_v8 = vpack.c.bf16 %v235_v58, %v231_v56  ;;  %v212_v30 = vadd.f32 %v539_v27, %v555_v50 }
  0xc0   :  { %v271_v3 = vpack.c.bf16 %v254_v62, %v254_v62  ;;  %v264_v62 = vpack.c.bf16 %v243_v42, %v239_v32  ;;  %v270_v5 = vpack.c.bf16 %v253_v52, %v249_v63  ;;  %v259_v7 = vpack.c.bf16 %v234_v55, %v230_v6 }
  0xc1   :  { %v272_v10 = vpack.c.bf16 %v255_v1, %v255_v1  ;;  %v236_v2 = vmax.f32 %v186_v39, 0.0  ;;  %v237_v6 = vmax.f32 %v214_v34, 0.0  ;;  %v233_v11 = vmax.f32 %v212_v30, 0.0 }
  0xc2   :  { %v198_v14 = vpop.f32.mrf.mxu2  ;;  %v287_v15 = vsel %vm285_vm2, %v271_v3, 0  ;;  %v269_v3 = vpack.c.bf16 %v252_v51, %v248_v49 }
  0xc3   :  { %v199_v18 = vadd.f32 %v198_v14, %v70_v41  ;;  %v226_v19 = vpop.f32.mrf.mxu3  ;;  %302 = vmatpush.bf16.msrb.mxu0 %v287_v15  ;;  %v290_v20 = vsel %vm285_vm2, %v272_v10, 0  ;;  %v144_v21 = vpop.f32.mrf.mxu0 }
  0xc4   :  { %v227_v23 = vadd.f32 %v226_v19, %v70_v41  ;;  %315 = vmatpush.bf16.msrb.mxu1 %v290_v20  ;;  %v172_v24 = vpop.f32.mrf.mxu1  ;;  %v191_v41 = vadd.f32 %v549_v38, %v553_v43  ;;  %v217_v38 = vadd.f32 %v547_v35, %v50_v0  ;;  %v184_v35 = vadd.f32 %v537_v26, %v555_v50 }
  0xc5   :  { %v256_v37 = vmax.f32 %v199_v18, 0.0  ;;  %v240_v0 = vmax.f32 %v189_v45, 0.0  ;;  %v262_v50 = vpack.c.bf16 %v237_v6, %v233_v11 }
  0xc6   :  { %v257_v46 = vmax.f32 %v227_v23, 0.0  ;;  %v244_v43 = vmax.f32 %v191_v41, 0.0  ;;  %v241_v9 = vmax.f32 %v217_v38, 0.0  ;;  %v232_v26 = vmax.f32 %v184_v35, 0.0 }
  0xc7   :  { %v273_v53 = vpack.c.bf16 %v256_v37, %v256_v37  ;;  %303 = vmatpush.bf16.msrb.mxu0 %v267_v40 }
  0xc8   :  { %v274_v57 = vpack.c.bf16 %v257_v46, %v257_v46  ;;  %316 = vmatpush.bf16.msrb.mxu1 %v268_v29  ;;  %v265_v54 = vpack.c.bf16 %v244_v43, %v240_v0  ;;  %v266_v10 = vpack.c.bf16 %v245_v4, %v241_v9  ;;  %v261_v27 = vpack.c.bf16 %v236_v2, %v232_v26 }
  0xc9   :  { %v293_v44 = vsel %vm285_vm2, %v273_v53, 0 }
  0xca   :  { %v200_v60 = vpop.f32.mrf.mxu2  ;;  %328 = vmatpush.bf16.msrb.mxu2 %v293_v44  ;;  %v296_v61 = vsel %vm285_vm2, %v274_v57, 0 }
  0xcb   :  { %v228_v1 = vpop.f32.mrf.mxu3  ;;  %341 = vmatpush.bf16.msrb.mxu3 %v296_v61  ;;  %304 = vmatpush.bf16.msrb.mxu0 %v263_v59 }
  0xcc   :  { %317 = vmatpush.bf16.msrb.mxu1 %v264_v62 }
  0xce   :  { %329 = vmatpush.bf16.msrb.mxu2 %v269_v3 }
  0xcf   :  { %342 = vmatpush.bf16.msrb.mxu3 %v270_v5  ;;  %305 = vmatpush.bf16.msrb.mxu0 %v259_v7 }
  0xd0   :  { %318 = vmatpush.bf16.msrb.mxu1 %v260_v8 }
  0xd2   :  { %330 = vmatpush.bf16.msrb.mxu2 %v265_v54  ;;  %408 = vmatmul.msk.bf16.vlgmr.msrb.gmra.mxu0 %vm281_vm3, %v258_v31 }
  0xd3   :  { %343 = vmatpush.bf16.msrb.mxu3 %v266_v10  ;;  %409 = vmatmul.msk.bf16.vlgmr.msrb.gmra.mxu1 %vm281_vm3, %v258_v31 }
  0xd6   :  { %331 = vmatpush.bf16.msrb.mxu2 %v261_v27 }
  0xd7   :  { %344 = vmatpush.bf16.msrb.mxu3 %v262_v50 }
  0xd9   :  { %410 = vmatmul.msk.bf16.vlgmr.msrb.gmra.mxu2 %vm281_vm3, %v258_v31 }
  0xda   :  { %411 = vmatmul.msk.bf16.vlgmr.msrb.gmra.mxu3 %vm281_vm3, %v258_v31 }
 0x14f   :  { %v307_v12 = vpop.f32.mrf.mxu0 }
 0x150   :  { %v320_v13 = vpop.f32.mrf.mxu1  ;;  %v308_v24 = vadd.f32 %v307_v12, %v279_v16 }
 0x151   :  { %v321_v17 = vadd.f32 %v320_v13, %v279_v16 }
 0x153   :  { %v354_v21 = vrot.slane %v321_v17, 6 }
 0x155   :  { %v357_v32 = vsel %vm109_vm0, %v308_v24, %v354_v21 }
 0x157   :  { %v309_v14 = vpop.f32.mrf.mxu0 }
 0x158   :  { %v322_v15 = vpop.f32.mrf.mxu1 }
 0x15c   :  { %v333_v18 = vpop.f32.mrf.mxu2 }
 0x15d   :  { %v334_v19 = vadd.f32 %v333_v18, %v279_v16  ;;  %v346_v20 = vpop.f32.mrf.mxu3 }
 0x15e   :  { %v347_v22 = vadd.f32 %v346_v20, %v279_v16 }
 0x15f   :  { %v355_v23 = vrot.slane %v334_v19, 4 }
 0x160   :  { %v356_v25 = vrot.slane %v347_v22, 2 }
 0x162   :  { %v359_v33 = vsel %vm358_vm4, %v355_v23, %v356_v25 }
 0x163   :  { %v361_v36 = vsel %vm360_vm5, %v357_v32, %v359_v33 }
 0x164   :  { %v335_v37 = vpop.f32.mrf.mxu2  ;;  %363 = vst [vmem:[#allocation2] sm:$0xff] %v361_v36 }
 0x165   :  { %v348_v40 = vpop.f32.mrf.mxu3  ;;  %374 = dma.vmem_to_hbm [thread:$0]  %s370_s17, 128, %s372_s20, [#allocation3]  }
 0x166   :  { %444 = dma.done.wait [#allocation3], 128  }
 0x167   :  { %445 = vsyncadd [#allocation3], 4294967168 }
 0x168   :  { %379 = vsyncpa [#allocation3], 1 }

</bundles_post_ra>
